<compile_context>
chip_gen: v7x
topology: tpu7x:2x2x1
jax: 0.10.0
libtpu: 0.0.40
codegen_flags: <defaults>
</compile_context>

<pallas_src>
import functools

import jax
import jax.numpy as jnp
from jax.experimental import pallas as pl
from jax.experimental.pallas import tpu as pltpu


def _round_up(x, m):
    return ((x + m - 1) // m) * m


def _pad_to(x, target_shape):
    pads = [(0, t - s) for s, t in zip(x.shape, target_shape)]
    if all(p == (0, 0) for p in pads):
        return x
    return jnp.pad(x, pads)


def _attention_layer_kernel(v_ref, wvt_ref, bv_ref, wot_ref, bo_ref, o_ref, *,
                            inv_s):
    """One block of Bc batch rows per grid step.

    v_ref   : (Bc, S_pad, d_pad)   VMEM  zero-padded values
    wvt_ref : (d_pad, hdv_pad)     VMEM  value_projection weight, pre-transposed
    bv_ref  : (1, hdv_pad)         VMEM
    wot_ref : (hdv_pad, d_pad)     VMEM  out_projection weight, pre-transposed
    bo_ref  : (1, d_pad)           VMEM
    o_ref   : (Bc, d_pad)          VMEM  ONE output row per batch element
    """
    # Uniform inner attention is a mean over S; it is linear, so pool first.
    # Padded S rows are zero, so the sum is exact; scale by 1/S (real S).
    pooled = jnp.sum(v_ref[...], axis=1) * inv_s                     # (Bc, d_pad)

    # value_projection on the pooled rows (weights pre-transposed: no .T here).
    vp = jnp.dot(pooled, wvt_ref[...], preferred_element_type=jnp.float32)
    vp = vp + bv_ref[...]                                            # (Bc, hdv_pad)

    # out_projection.
    out = jnp.dot(vp, wot_ref[...], preferred_element_type=jnp.float32)
    out = out + bo_ref[...]                                          # (Bc, d_pad)

    o_ref[...] = out.astype(o_ref.dtype)


@functools.partial(jax.jit, static_argnames=("n_heads", "return_attn"))
def attention_layer_forward(queries, values, attn_mask, params, *, n_heads,
                            return_attn=False):
    """Pallas-backed forward pass of AttentionLayer (mix=False)."""
    del attn_mask  # see TODO(synk): mask unused by the synthetic mean-pool attention
    B, L, d_model = queries.shape
    _, S, _ = values.shape
    H = n_heads

    wv = params["value_projection"]["weight"]    # (H*dv, d_model)
    bv = params["value_projection"]["bias"]      # (H*dv,)
    wo = params["out_projection"]["weight"]      # (d_model, H*dv)
    bo = params["out_projection"]["bias"]        # (d_model,)
    hdv = wv.shape[0]

    # ---- lane/sublane-friendly padded sizes ---------------------------------
    d_pad = _round_up(d_model, 128)    # lane dim
    hdv_pad = _round_up(hdv, 128)      # lane dim
    S_pad = _round_up(S, 8)            # sublane dim

    # ---- batch-block size: sublane-aligned; aim for >=2 grid steps when B is
    # large enough so both v7x TensorCores get work (single-TC on v5e/v6e). ---
    Bc = min(128, _round_up(pl.cdiv(B, 2), 8))
    Bc = min(Bc, _round_up(B, 8))

    # ---- explicit VMEM budget (v7x physical VMEM is only 64 MiB) ------------
    def vmem_bytes(bc):
        pipelined = 2 * (bc * S_pad * d_pad + bc * d_pad)        # double-buffered
        resident = 2 * (d_pad * hdv_pad + hdv_pad * d_pad + hdv_pad + d_pad)
        return 4 * (pipelined + resident)

    vmem_budget = 40 << 20
    while vmem_bytes(Bc) > vmem_budget and Bc > 8:
        Bc = max(8, _round_up(Bc // 2, 8))
    vmem_limit = int(min(48 << 20, max(16 << 20, vmem_bytes(Bc) + (2 << 20))))

    B_pad = _round_up(B, Bc)
    grid = (B_pad // Bc,)

    # ---- one-time layout plumbing OUTSIDE the kernel (fused by XLA) ---------
    # TODO(synk): for large d_model/hdv cast the weights to bf16 (halves HBM
    #             weight traffic, fits v7x VMEM); kept f32 here to match the
    #             f32 reference at these shapes.
    v_p = _pad_to(values.astype(jnp.float32), (B_pad, S_pad, d_pad))
    wvt = _pad_to(wv.T.astype(jnp.float32), (d_pad, hdv_pad))      # no in-kernel .T
    wot = _pad_to(wo.T.astype(jnp.float32), (hdv_pad, d_pad))
    bv2 = _pad_to(bv.reshape(1, hdv).astype(jnp.float32), (1, hdv_pad))
    bo2 = _pad_to(bo.reshape(1, d_model).astype(jnp.float32), (1, d_pad))

    kernel = functools.partial(_attention_layer_kernel, inv_s=1.0 / S)

    out_rows = pl.pallas_call(
        kernel,
        out_shape=jax.ShapeDtypeStruct((B_pad, d_pad), jnp.float32),
        grid_spec=pltpu.PrefetchScalarGridSpec(
            num_scalar_prefetch=0,
            grid=grid,
            in_specs=[
                pl.BlockSpec((Bc, S_pad, d_pad), lambda b: (b, 0, 0)),
                pl.BlockSpec((d_pad, hdv_pad), lambda b: (0, 0)),
                pl.BlockSpec((1, hdv_pad), lambda b: (0, 0)),
                pl.BlockSpec((hdv_pad, d_pad), lambda b: (0, 0)),
                pl.BlockSpec((1, d_pad), lambda b: (0, 0)),
            ],
            out_specs=pl.BlockSpec((Bc, d_pad), lambda b: (b, 0)),
        ),
        compiler_params=pltpu.CompilerParams(
            dimension_semantics=("parallel",),
            vmem_limit_bytes=vmem_limit),
    )(v_p, wvt, bv2, wot, bo2)

    # Un-pad and broadcast the single per-batch row to the L query slots here
    # (keeps the kernel's HBM writeback L-x smaller than the previous version).
    out = jnp.broadcast_to(out_rows[:B, None, :d_model], (B, L, d_model))
    out = out.astype(queries.dtype)

    attn = None
    if return_attn:
        # Constant uniform attention of the mean-pool inner attention; only
        # materialized when the caller actually asks for it.
        attn = jnp.full((B, H, L, S), 1.0 / S, dtype=jnp.float32)
    return out, attn


def init_params(key, d_model, n_heads, d_values=None):
    """Deterministic parameter init mirroring the PyTorch module's shapes."""
    d_values = d_values or d_model // n_heads
    hdv = d_values * n_heads
    k1, k2, k3, k4 = jax.random.split(key, 4)
    lim_v = 1.0 / (d_model ** 0.5)
    lim_o = 1.0 / (hdv ** 0.5)
    return {
        "value_projection": {
            "weight": jax.random.uniform(k1, (hdv, d_model), jnp.float32,
                                         -lim_v, lim_v),
            "bias": jax.random.uniform(k2, (hdv,), jnp.float32, -lim_v, lim_v),
        },
        "out_projection": {
            "weight": jax.random.uniform(k3, (d_model, hdv), jnp.float32,
                                         -lim_o, lim_o),
            "bias": jax.random.uniform(k4, (d_model,), jnp.float32,
                                       -lim_o, lim_o),
        },
    }


def _reference_forward(queries, values, params, n_heads):
    """Pure-JAX reference (project-then-mean order, like the PyTorch module)."""
    B, L, d_model = queries.shape
    _, S, _ = values.shape
    wv = params["value_projection"]["weight"]
    bv = params["value_projection"]["bias"]
    wo = params["out_projection"]["weight"]
    bo = params["out_projection"]["bias"]
    vp = values @ wv.T + bv                       # (B, S, H*dv)
    pooled = jnp.mean(vp, axis=1, keepdims=True)  # (B, 1, H*dv)
    ctx = jnp.broadcast_to(pooled, (B, L, vp.shape[-1]))
    out = ctx @ wo.T + bo                         # (B, L, d_model)
    attn = jnp.full((B, n_heads, L, S), 1.0 / S, dtype=jnp.float32)
    return out, attn


if __name__ == "__main__":
    B, L, S, d_model, n_heads = 2, 8, 8, 32, 4

    key = jax.random.PRNGKey(0)
    kq, kv, kp = jax.random.split(key, 3)
    queries = jax.random.normal(kq, (B, L, d_model), jnp.float32)
    values = jax.random.normal(kv, (B, S, d_model), jnp.float32)
    attn_mask = jnp.ones((B, L, S), jnp.float32)   # accepted, unused (see TODO)

    params = init_params(kp, d_model, n_heads)

    # Default path: attention matrix NOT materialized.
    out, attn = attention_layer_forward(queries, values, attn_mask, params,
                                        n_heads=n_heads)
    out = jax.block_until_ready(out)

    ref_out, ref_attn = _reference_forward(queries, values, params, n_heads)
    assert out.shape == (B, L, d_model)
    assert attn is None
    # mean-then-project differs from project-then-mean only by fp summation order
    assert jnp.allclose(out, ref_out, atol=1e-4, rtol=1e-4)

    # Opt-in attention materialization path.
    out2, attn2 = attention_layer_forward(queries, values, attn_mask, params,
                                          n_heads=n_heads, return_attn=True)
    attn2 = jax.block_until_ready(attn2)
    assert attn2.shape == (B, n_heads, L, S)
    assert jnp.allclose(attn2, ref_attn)
    assert jnp.allclose(out2, ref_out, atol=1e-4, rtol=1e-4)

    print("KERNEL_OK")
</pallas_src>

<mosaic_0001>
module attributes {stable_mosaic.version = 11 : i64} {
  func.func @_attention_layer_kernel(%arg0: i32, %arg1: memref<8x8x128xf32, #tpu.memory_space<vmem>>, %arg2: memref<128x128xf32, #tpu.memory_space<vmem>>, %arg3: memref<1x128xf32, #tpu.memory_space<vmem>>, %arg4: memref<128x128xf32, #tpu.memory_space<vmem>>, %arg5: memref<1x128xf32, #tpu.memory_space<vmem>>, %arg6: memref<8x128xf32, #tpu.memory_space<vmem>>) attributes {dimension_semantics = [#tpu.dimension_semantics<parallel>], iteration_bounds = array<i64: 1>, scalar_prefetch = 0 : i64, scratch_operands = 0 : i64, tpu.core_type = #tpu.core_type<tc>, window_params = [{transform_indices = @transform_0, window_bounds = array<i64: 8, 8, 128>}, {pipeline_mode = #tpu.pipeline_mode<synchronous>, transform_indices = @transform_1, window_bounds = array<i64: 128, 128>}, {pipeline_mode = #tpu.pipeline_mode<synchronous>, transform_indices = @transform_2, window_bounds = array<i64: 1, 128>}, {pipeline_mode = #tpu.pipeline_mode<synchronous>, transform_indices = @transform_3, window_bounds = array<i64: 128, 128>}, {pipeline_mode = #tpu.pipeline_mode<synchronous>, transform_indices = @transform_4, window_bounds = array<i64: 1, 128>}, {transform_indices = @transform_5, window_bounds = array<i64: 8, 128>}]} {
    %c0 = arith.constant 0 : index
    %c0_0 = arith.constant 0 : index
    %c0_1 = arith.constant 0 : index
    %0 = vector.load %arg1[%c0, %c0_0, %c0_1] : memref<8x8x128xf32, #tpu.memory_space<vmem>>, vector<8x8x128xf32>
    %cst = arith.constant dense<0.000000e+00> : vector<8x128xf32>
    %1 = vector.multi_reduction <add>, %0, %cst [1] : vector<8x8x128xf32> to vector<8x128xf32>
    %cst_2 = arith.constant 1.250000e-01 : f32
    %2 = vector.broadcast %cst_2 : f32 to vector<8x128xf32>
    %3 = arith.mulf %1, %2 : vector<8x128xf32>
    %c0_3 = arith.constant 0 : index
    %c0_4 = arith.constant 0 : index
    %4 = vector.load %arg2[%c0_3, %c0_4] : memref<128x128xf32, #tpu.memory_space<vmem>>, vector<128x128xf32>
    %cst_5 = arith.constant dense<0.000000e+00> : vector<8x128xf32>
    %5 = tpu.matmul %3, %4, %cst_5 {dimension_numbers = #tpu.dot_dimension_numbers<[1], [0], [0], [1], [0, 0, 1, 1], [], []>} : vector<8x128xf32>, vector<128x128xf32>, vector<8x128xf32> -> vector<8x128xf32>
    %c0_6 = arith.constant 0 : index
    %c0_7 = arith.constant 0 : index
    %6 = vector.load %arg3[%c0_6, %c0_7] : memref<1x128xf32, #tpu.memory_space<vmem>>, vector<1x128xf32>
    %7 = vector.broadcast %6 : vector<1x128xf32> to vector<8x128xf32>
    %8 = arith.addf %5, %7 : vector<8x128xf32>
    %c0_8 = arith.constant 0 : index
    %c0_9 = arith.constant 0 : index
    %9 = vector.load %arg4[%c0_8, %c0_9] : memref<128x128xf32, #tpu.memory_space<vmem>>, vector<128x128xf32>
    %cst_10 = arith.constant dense<0.000000e+00> : vector<8x128xf32>
    %10 = tpu.matmul %8, %9, %cst_10 {dimension_numbers = #tpu.dot_dimension_numbers<[1], [0], [0], [1], [0, 0, 1, 1], [], []>} : vector<8x128xf32>, vector<128x128xf32>, vector<8x128xf32> -> vector<8x128xf32>
    %c0_11 = arith.constant 0 : index
    %c0_12 = arith.constant 0 : index
    %11 = vector.load %arg5[%c0_11, %c0_12] : memref<1x128xf32, #tpu.memory_space<vmem>>, vector<1x128xf32>
    %12 = vector.broadcast %11 : vector<1x128xf32> to vector<8x128xf32>
    %13 = arith.addf %10, %12 : vector<8x128xf32>
    %c0_13 = arith.constant 0 : index
    %c0_14 = arith.constant 0 : index
    %14 = vector.load %arg6[%c0_13, %c0_14] : memref<8x128xf32, #tpu.memory_space<vmem>>, vector<8x128xf32>
    tpu.vector_store %arg6[%c0_13, %c0_14], %13 {strides = array<i32>} : memref<8x128xf32, #tpu.memory_space<vmem>>, vector<8x128xf32>,
    return
  }
  func.func @transform_0(%arg0: i32) -> (i32, i32, i32) {
    %c0_i32 = arith.constant 0 : i32
    %c0_i32_0 = arith.constant 0 : i32
    %c0_i32_1 = arith.constant 0 : i32
    return %arg0, %c0_i32, %c0_i32_0 : i32, i32, i32
  }
  func.func @transform_1(%arg0: i32) -> (i32, i32) {
    %c0_i32 = arith.constant 0 : i32
    %c0_i32_0 = arith.constant 0 : i32
    %c0_i32_1 = arith.constant 0 : i32
    return %c0_i32, %c0_i32_0 : i32, i32
  }
  func.func @transform_2(%arg0: i32) -> (i32, i32) {
    %c0_i32 = arith.constant 0 : i32
    %c0_i32_0 = arith.constant 0 : i32
    %c0_i32_1 = arith.constant 0 : i32
    return %c0_i32, %c0_i32_0 : i32, i32
  }
  func.func @transform_3(%arg0: i32) -> (i32, i32) {
    %c0_i32 = arith.constant 0 : i32
    %c0_i32_0 = arith.constant 0 : i32
    %c0_i32_1 = arith.constant 0 : i32
    return %c0_i32, %c0_i32_0 : i32, i32
  }
  func.func @transform_4(%arg0: i32) -> (i32, i32) {
    %c0_i32 = arith.constant 0 : i32
    %c0_i32_0 = arith.constant 0 : i32
    %c0_i32_1 = arith.constant 0 : i32
    return %c0_i32, %c0_i32_0 : i32, i32
  }
  func.func @transform_5(%arg0: i32) -> (i32, i32) {
    %c0_i32 = arith.constant 0 : i32
    %c0_i32_0 = arith.constant 0 : i32
    return %arg0, %c0_i32 : i32, i32
  }
}

</mosaic_0001>

<bundles_post_ra>
// kernel: attention_layer_forward.1
= control target key start
LH: loop header
LB: loop body
LE: loop exit
PB: predicated region body
PF: predicated region fallthrough
CT: control target
= control target key end

     0   :  { %v455_v0 = vmov 0.0|0.0   ;;  %vm456_vm0 = vmmov 0   ;;  %v457_v4 = vmov 0.0   ;;  %vm115_vm1 = vcmask 1041409   ;;  %s642_s1 = inlined_call_operand.vmem [shape: f32[128,128], index: 1, kind: input, shape index: {}]   ;;  %s643_s0 = inlined_call_operand.vmem [shape: f32[8,8,128], index: 0, kind: input, shape index: {}]   ;;  %s644_s3 = inlined_call_operand.vmem [shape: f32[128,128], index: 3, kind: input, shape index: {}]   ;;  %s645_s2 = inlined_call_operand.vmem [shape: f32[1,128], index: 2, kind: input, shape index: {}]   ;;  %s646_s4 = inlined_call_operand.vmem [shape: f32[1,128], index: 4, kind: input, shape index: {}]   ;;  %s647_s5 = inlined_call_operand.vmem [shape: f32[8,128], index: 5, kind: output, shape index: {}]  }
   0x1   :  { %404 = vmatprep.subr.bf16.mxu0 %v455_v0  ;;  %v84_v1 = vld [vmem:[%s642_s1] sm:$0xff]  ;;  %v85_v2 = vld [vmem:[%s642_s1 + $0x8] sm:$0xff]  ;;  %v86_v3 = vld [vmem:[%s642_s1 + $0x10] sm:$0xff]  ;;  %366 = vmatprep.mubr.msk.f32.mxu0 %vm456_vm0, %v457_v4  ;;  %vm117_vm2 = vcmask 1042434   ;;  %vm119_vm3 = vcmask 1043459   ;;  %vm121_vm4 = vcmask 1044484  }
   0x2   :  { %v405_v5 = vpack.c.bf16 %v85_v2, %v84_v1  ;;  %v87_v6 = vld [vmem:[%s642_s1 + $0x18] sm:$0xff]  ;;  %428 = vmatprep.subr.bf16.mxu1 %v455_v0  ;;  %401 = vmatprep.mubr.msk.f32.mxu1 %vm456_vm0, %v457_v4  ;;  %v88_v7 = vld [vmem:[%s642_s1 + $0x20] sm:$0xff]  ;;  %v89_v9 = vld [vmem:[%s642_s1 + $0x28] sm:$0xff]  ;;  %vm123_vm5 = vcmask 1045509   ;;  %vm125_vm6 = vcmask 1046534   ;;  %vm127_vm7 = vcmask 1047559  }
   0x3   :  { %v408_v8 = vpack.c.bf16 %v87_v6, %v86_v3  ;;  %v90_v10 = vld [vmem:[%s642_s1 + $0x30] sm:$0xff]  ;;  %v91_v11 = vld [vmem:[%s642_s1 + $0x38] sm:$0xff]  ;;  %v518_v12 = vld [vmem:[%s642_s1 + $0x40] sm:$0xff]  ;;  %v411_v16 = vpack.c.bf16 %v89_v9, %v88_v7 }
   0x4   :  { %406 = vmatpush3.bf16.msra.mxu0 %v405_v5  ;;  %v523_v13 = vld [vmem:[%s642_s1 + $0x48] sm:$0xff]  ;;  %v20_v14 = vld [vmem:[%s643_s0] sm:$0xff]  ;;  %v414_v17 = vpack.c.bf16 %v91_v11, %v90_v10  ;;  %v22_v18 = vld [vmem:[%s643_s0 + $0x10] sm:$0xff] }
   0x5   :  { %407 = vmatprep.subr.bf16.mxu0 %v455_v0  ;;  %v21_v15 = vld [vmem:[%s643_s0 + $0x8] sm:$0xff]  ;;  %v23_v19 = vld [vmem:[%s643_s0 + $0x18] sm:$0xff]  ;;  %v24_v20 = vld [vmem:[%s643_s0 + $0x20] sm:$0xff]  ;;  %v28_v21 = vrot.slane %v20_v14, 4  ;;  %v417_v23 = vpack.c.bf16 %v523_v13, %v518_v12  ;;  %v40_v27 = vrot.slane %v22_v18, 4 }
   0x6   :  { %v34_v22 = vrot.slane %v21_v15, 4  ;;  %v25_v24 = vld [vmem:[%s643_s0 + $0x28] sm:$0xff]  ;;  %v26_v25 = vld [vmem:[%s643_s0 + $0x30] sm:$0xff]  ;;  %v27_v26 = vld [vmem:[%s643_s0 + $0x38] sm:$0xff]  ;;  %v46_v28 = vrot.slane %v23_v19, 4  ;;  %v52_v29 = vrot.slane %v24_v20, 4 }
   0x7   :  { %v29_v30 = vadd.f32 %v28_v21, %v20_v14  ;;  %v58_v32 = vrot.slane %v25_v24, 4  ;;  %v64_v33 = vrot.slane %v26_v25, 4  ;;  %v41_v34 = vadd.f32 %v40_v27, %v22_v18  ;;  %v94_v58 = vld [vmem:[%s642_s1 + $0x50] sm:$0xff]  ;;  %v95_v59 = vld [vmem:[%s642_s1 + $0x58] sm:$0xff]  ;;  %v201_v9 = vld [vmem:[%s644_s3 + $0x8] sm:$0xff] }
   0x8   :  { %409 = vmatpush3.bf16.msra.mxu0 %v408_v8  ;;  %v35_v31 = vadd.f32 %v34_v22, %v21_v15  ;;  %v47_v35 = vadd.f32 %v46_v28, %v23_v19  ;;  %v53_v36 = vadd.f32 %v52_v29, %v24_v20  ;;  %v70_v37 = vrot.slane %v27_v26, 4  ;;  %v200_v8 = vld [vmem:[%s644_s3] sm:$0xff]  ;;  %v202_v18 = vld [vmem:[%s644_s3 + $0x10] sm:$0xff]  ;;  %v203_v19 = vld [vmem:[%s644_s3 + $0x18] sm:$0xff] }
   0x9   :  { %410 = vmatprep.subr.bf16.mxu0 %v455_v0  ;;  %v30_v38 = vrot.slane %v29_v30, 2  ;;  %v59_v40 = vadd.f32 %v58_v32, %v25_v24  ;;  %v65_v41 = vadd.f32 %v64_v33, %v26_v25  ;;  %v42_v42 = vrot.slane %v41_v34, 2  ;;  %v96_v20 = vld [vmem:[%s642_s1 + $0x60] sm:$0xff]  ;;  %v97_v21 = vld [vmem:[%s642_s1 + $0x68] sm:$0xff] }
   0xa   :  { %v36_v39 = vrot.slane %v35_v31, 2  ;;  %v48_v43 = vrot.slane %v47_v35, 2  ;;  %v54_v44 = vrot.slane %v53_v36, 2  ;;  %v71_v45 = vadd.f32 %v70_v37, %v27_v26  ;;  %v204_v32 = vld [vmem:[%s644_s3 + $0x20] sm:$0xff]  ;;  %v205_v33 = vld [vmem:[%s644_s3 + $0x28] sm:$0xff] }
   0xb   :  { %v31_v46 = vadd.f32 %v30_v38, %v29_v30  ;;  %v60_v48 = vrot.slane %v59_v40, 2  ;;  %v66_v49 = vrot.slane %v65_v41, 2  ;;  %v43_v50 = vadd.f32 %v42_v42, %v41_v34  ;;  %v98_v34 = vld [vmem:[%s642_s1 + $0x70] sm:$0xff]  ;;  %v207_v42 = vld [vmem:[%s644_s3 + $0x38] sm:$0xff] }
   0xc   :  { %412 = vmatpush3.bf16.msra.mxu0 %v411_v16  ;;  %v37_v47 = vadd.f32 %v36_v39, %v35_v31  ;;  %v49_v51 = vadd.f32 %v48_v43, %v47_v35  ;;  %v55_v52 = vadd.f32 %v54_v44, %v53_v36  ;;  %v72_v53 = vrot.slane %v71_v45, 2  ;;  %v99_v35 = vld [vmem:[%s642_s1 + $0x78] sm:$0xff] }
   0xd   :  { %413 = vmatprep.subr.bf16.mxu0 %v455_v0  ;;  %v32_v54 = vrot.slane %v31_v46, 1  ;;  %v61_v56 = vadd.f32 %v60_v48, %v59_v40  ;;  %v67_v57 = vadd.f32 %v66_v49, %v65_v41  ;;  %v44_v60 = vrot.slane %v43_v50, 1  ;;  %v206_v41 = vld [vmem:[%s644_s3 + $0x30] sm:$0xff] }
   0xe   :  { %v38_v55 = vrot.slane %v37_v47, 1  ;;  %v50_v61 = vrot.slane %v49_v51, 1  ;;  %v56_v62 = vrot.slane %v55_v52, 1  ;;  %v73_v63 = vadd.f32 %v72_v53, %v71_v45  ;;  %v210_v49 = vld [vmem:[%s644_s3 + $0x50] sm:$0xff]  ;;  %v213_v53 = vld [vmem:[%s644_s3 + $0x68] sm:$0xff] }
   0xf   :  { %v33_v1 = vadd.f32 %v32_v54, %v31_v46  ;;  %v62_v3 = vrot.slane %v61_v56, 1  ;;  %v68_v4 = vrot.slane %v67_v57, 1  ;;  %v45_v5 = vadd.f32 %v44_v60, %v43_v50  ;;  %v208_v46 = vld [vmem:[%s644_s3 + $0x40] sm:$0xff]  ;;  %v211_v50 = vld [vmem:[%s644_s3 + $0x58] sm:$0xff] }
  0x10   :  { %415 = vmatpush3.bf16.msra.mxu0 %v414_v17  ;;  %v39_v2 = vadd.f32 %v38_v55, %v37_v47  ;;  %v51_v6 = vadd.f32 %v50_v61, %v49_v51  ;;  %v57_v7 = vadd.f32 %v56_v62, %v55_v52  ;;  %v420_v10 = vpack.c.bf16 %v95_v59, %v94_v58  ;;  %v209_v47 = vld [vmem:[%s644_s3 + $0x48] sm:$0xff]  ;;  %v212_v52 = vld [vmem:[%s644_s3 + $0x60] sm:$0xff]  ;;  %v214_v55 = vld [vmem:[%s644_s3 + $0x70] sm:$0xff] }
  0x11   :  { %416 = vmatprep.subr.bf16.mxu0 %v455_v0  ;;  %v63_v11 = vadd.f32 %v62_v3, %v61_v56  ;;  %v76_v12 = vmul.f32 0.125, %v33_v1  ;;  %v74_v14 = vrot.slane %v73_v63, 1  ;;  %v78_v15 = vmul.f32 0.125, %v45_v5  ;;  %v215_v56 = vld [vmem:[%s644_s3 + $0x78] sm:$0xff]  ;;  %v298_v58 = vld [vmem:[%s645_s2] ss:$0 sm:$0xff] }
  0x12   :  { %v77_v13 = vmul.f32 0.125, %v39_v2  ;;  %v79_v16 = vmul.f32 0.125, %v51_v6  ;;  %v80_v17 = vmul.f32 0.125, %v57_v7  ;;  %v69_v22 = vadd.f32 %v68_v4, %v67_v57 }
  0x13   :  { %v429_v24 = vpack.c.bf16 %v201_v9, %v200_v8  ;;  %v81_v25 = vmul.f32 0.125, %v63_v11  ;;  %v432_v28 = vpack.c.bf16 %v203_v19, %v202_v18  ;;  %v423_v29 = vpack.c.bf16 %v97_v21, %v96_v20 }
  0x14   :  { %418 = vmatpush3.bf16.msra.mxu0 %v417_v23  ;;  %v116_v23 = vsel %vm115_vm1, %v77_v13, %v76_v12  ;;  %v75_v30 = vadd.f32 %v74_v14, %v73_v63  ;;  %v82_v36 = vmul.f32 0.125, %v69_v22  ;;  %v435_v38 = vpack.c.bf16 %v205_v33, %v204_v32 }
  0x15   :  { %419 = vmatprep.subr.bf16.mxu0 %v455_v0  ;;  %v118_v26 = vsel %vm117_vm2, %v78_v15, %v116_v23  ;;  %430 = vmatpush3.bf16.msra.mxu1 %v429_v24  ;;  %v426_v39 = vpack.c.bf16 %v99_v35, %v98_v34  ;;  %v438_v44 = vpack.c.bf16 %v207_v42, %v206_v41 }
  0x16   :  { %v120_v27 = vsel %vm119_vm3, %v79_v16, %v118_v26  ;;  %431 = vmatprep.subr.bf16.mxu1 %v455_v0  ;;  %v83_v40 = vmul.f32 0.125, %v75_v30  ;;  %v441_v48 = vpack.c.bf16 %v209_v47, %v208_v46  ;;  %v444_v51 = vpack.c.bf16 %v211_v50, %v210_v49 }
  0x17   :  { %v122_v31 = vsel %vm121_vm4, %v80_v17, %v120_v27  ;;  %v447_v54 = vpack.c.bf16 %v213_v53, %v212_v52  ;;  %v450_v57 = vpack.c.bf16 %v215_v56, %v214_v55 }
  0x18   :  { %421 = vmatpush3.bf16.msra.mxu0 %v420_v10  ;;  %v124_v37 = vsel %vm123_vm5, %v81_v25, %v122_v31 }
  0x19   :  { %422 = vmatprep.subr.bf16.mxu0 %v455_v0  ;;  %433 = vmatpush3.bf16.msra.mxu1 %v432_v28  ;;  %v126_v43 = vsel %vm125_vm6, %v82_v36, %v124_v37 }
  0x1a   :  { %434 = vmatprep.subr.bf16.mxu1 %v455_v0  ;;  %v128_v45 = vsel %vm127_vm7, %v83_v40, %v126_v43 }
  0x1c   :  { %424 = vmatpush3.bf16.msra.mxu0 %v423_v29 }
  0x1d   :  { %425 = vmatprep.subr.bf16.mxu0 %v455_v0  ;;  %436 = vmatpush3.bf16.msra.mxu1 %v435_v38 }
  0x1e   :  { %437 = vmatprep.subr.bf16.mxu1 %v455_v0 }
  0x20   :  { %427 = vmatpush3.bf16.msra.mxu0 %v426_v39 }
  0x21   :  { %439 = vmatpush3.bf16.msra.mxu1 %v438_v44 }
  0x22   :  { %440 = vmatprep.subr.bf16.mxu1 %v455_v0 }
  0x23   :  { %367 = vmatmul.mubr.f32.vlgmr.msra.gmra.mrb[0].mxu0 %v128_v45 }
  0x25   :  { %442 = vmatpush3.bf16.msra.mxu1 %v441_v48 }
  0x26   :  { %443 = vmatprep.subr.bf16.mxu1 %v455_v0 }
  0x29   :  { %445 = vmatpush3.bf16.msra.mxu1 %v444_v51 }
  0x2a   :  { %446 = vmatprep.subr.bf16.mxu1 %v455_v0 }
  0x2d   :  { %448 = vmatpush3.bf16.msra.mxu1 %v447_v54 }
  0x2e   :  { %449 = vmatprep.subr.bf16.mxu1 %v455_v0  ;;  %v299_v0 = vld [vmem:[%s646_s4] ss:$0 sm:$0xff] }
  0x31   :  { %451 = vmatpush3.bf16.msra.mxu1 %v450_v57 }
  0xf6   :  { %v196_v59 = vpop.f32.mrb[0].mxu0 }
  0xf7   :  { %v197_v60 = vadd.f32 %v298_v58, %v196_v59  ;;  %v368_v61 = vpop.f32.mrb[1].mxu0 }
  0xf9   :  { %402 = vmatmul.mubr.f32.vlgmr.msra.gmra.mrb[0].mxu1 %v197_v60 }
 0x1cc   :  { %v289_v62 = vpop.f32.mrb[0].mxu1 }
 0x1cd   :  { %v290_v63 = vadd.f32 %v299_v0, %v289_v62  ;;  %v403_v1 = vpop.f32.mrb[1].mxu1 }
 0x1cf   :  { %293 = vst [vmem:[%s647_s5] sm:$0xff] %v290_v63 }

</bundles_post_ra>
